<compile_context>
chip_gen: v5e
topology: v5e:2x2
jax: 0.10.0
libtpu: 0.0.40
codegen_flags: <defaults>
</compile_context>

<pallas_src>
import functools

import jax
import jax.numpy as jnp
from jax import lax
from jax.experimental import pallas as pl
from jax.experimental.pallas import tpu as pltpu


_INV_SQRT2 = 0.7071067811865476


def _gelu_exact(x):
    # nn.GELU() default: 0.5 * x * (1 + erf(x / sqrt(2)))
    return 0.5 * x * (1.0 + lax.erf(x * _INV_SQRT2))


def _linear_act_kernel(x_ref, w_ref, b_ref, o_ref, acc_ref, *, apply_act):
    """Fused (x @ w + b) -> GELU for one (tm, tn) output tile.

    Grid = (Mp//tm, Np//tn, Kp//tk); K is the reduction axis (last, 'arbitrary').
    x/w tiles are bf16, accumulation is f32, epilogue (bias + GELU) is f32.
    """
    k = pl.program_id(2)

    @pl.when(k == 0)
    def _():
        acc_ref[...] = jnp.zeros_like(acc_ref)

    acc_ref[...] += jnp.dot(
        x_ref[...], w_ref[...], preferred_element_type=jnp.float32
    )

    @pl.when(k == pl.num_programs(2) - 1)
    def _():
        z = acc_ref[...] + b_ref[...].astype(jnp.float32)
        if apply_act:
            z = _gelu_exact(z)
        o_ref[...] = z.astype(o_ref.dtype)


def _round_up(a, m):
    return ((a + m - 1) // m) * m


def _choose_tiles(M, N, K):
    """Pick per-problem tiles: whole-batch rows, lane-dense N, large K."""
    # Rows: keep the whole (small) batch per step; pad to 16 (bf16 sublane
    # packing) and cap at 256 so big batches still tile.
    tm = min(_round_up(M, 16), 256)
    # Output lanes: multiples of 256 where N allows (matches v6e/v7x MXU and
    # keeps >=2 N blocks for v7x's two TensorCores); 128-multiple otherwise.
    if N >= 1024:
        tn = 512
    elif N >= 512:
        tn = 256
    else:
        tn = _round_up(N, 128)
    # Reduction: big K tile -> few steps on the 'arbitrary' grid axis.
    tk = min(_round_up(K, 128), 1024)
    return tm, tn, tk


def linear_gelu(x2d, w_t, b, *, apply_act=True, compute_dtype=jnp.bfloat16,
                out_dtype=None):
    """x2d: [M, K], w_t: [K, N] (transposed from PyTorch [N, K]), b: [N]."""
    M, K = x2d.shape
    K2, N = w_t.shape
    assert K == K2
    out_dtype = out_dtype or x2d.dtype

    tm, tn, tk = _choose_tiles(M, N, K)
    Mp, Np, Kp = _round_up(M, tm), _round_up(N, tn), _round_up(K, tk)

    # Pad to tile multiples (zeros contribute nothing to the dot / are sliced
    # off the output) and cast matmul operands to bf16 for MXU / HBM savings.
    x_p = jnp.pad(x2d, ((0, Mp - M), (0, Kp - K))).astype(compute_dtype)
    w_p = jnp.pad(w_t, ((0, Kp - K), (0, Np - N))).astype(compute_dtype)
    b_p = jnp.pad(b, (0, Np - N)).astype(jnp.float32).reshape(1, Np)

    kernel = functools.partial(_linear_act_kernel, apply_act=apply_act)

    out = pl.pallas_call(
        kernel,
        out_shape=jax.ShapeDtypeStruct((Mp, Np), out_dtype),
        grid_spec=pltpu.PrefetchScalarGridSpec(
            num_scalar_prefetch=0,
            grid=(Mp // tm, Np // tn, Kp // tk),
            in_specs=[
                pl.BlockSpec((tm, tk), lambda i, j, k: (i, k)),   # x tile
                pl.BlockSpec((tk, tn), lambda i, j, k: (k, j)),   # w tile
                pl.BlockSpec((1, tn), lambda i, j, k: (0, j)),    # bias tile
            ],
            out_specs=pl.BlockSpec((tm, tn), lambda i, j, k: (i, j)),
            scratch_shapes=[pltpu.VMEM((tm, tn), jnp.float32)],
        ),
        compiler_params=pltpu.CompilerParams(
            dimension_semantics=("parallel", "parallel", "arbitrary"),
            vmem_limit_bytes=48 * 1024 * 1024,  # above scoped defaults, < 64 MiB (v7x)
        ),
    )(x_p, w_p, b_p)

    if Mp != M or Np != N:
        out = out[:M, :N]
    return out


def mlp_layer_forward(x, params):
    """x: [..., in_dims]; params: list of (W [out, in], b [out]) as in nn.Linear."""
    lead_shape = x.shape[:-1]
    h = x.reshape(-1, x.shape[-1])
    for (w, b) in params:
        # Every Linear in the reference module is followed by the GELU activation.
        h = linear_gelu(h, jnp.transpose(w), b, apply_act=True)
    return h.reshape(*lead_shape, h.shape[-1])


def init_mlp_params(key, in_dims, hidden_dims, dtype=jnp.float32):
    """Deterministic Kaiming-uniform-ish init matching nn.Linear shapes."""
    params = []
    dims = [in_dims] + list(hidden_dims)
    for i in range(len(hidden_dims)):
        fan_in, fan_out = dims[i], dims[i + 1]
        key, kw, kb = jax.random.split(key, 3)
        bound = 1.0 / jnp.sqrt(fan_in)
        w = jax.random.uniform(kw, (fan_out, fan_in), dtype, -bound, bound)
        b = jax.random.uniform(kb, (fan_out,), dtype, -bound, bound)
        params.append((w, b))
    return params


if __name__ == "__main__":
    # Small shapes consistent with the module: batch=2, seq=8, in_dims=128.
    in_dims = 128
    hidden_dims = [128]  # single Linear + GELU (module default style)

    key = jax.random.PRNGKey(0)
    kx, kp = jax.random.split(key)
    x = jax.random.normal(kx, (2, 8, in_dims), jnp.float32)
    params = init_mlp_params(kp, in_dims, hidden_dims)

    out = mlp_layer_forward(x, params)
    jax.block_until_ready(out)

    # Sanity check against a plain-JAX reference using the same bf16 matmul
    # inputs + f32 accumulation as the kernel.
    h = x.reshape(-1, in_dims)
    for (w, b) in params:
        z = jnp.dot(h.astype(jnp.bfloat16), w.T.astype(jnp.bfloat16),
                    preferred_element_type=jnp.float32) + b
        h = _gelu_exact(z).astype(x.dtype)
    ref = h.reshape(2, 8, hidden_dims[-1])

    assert out.shape == ref.shape
    assert jnp.allclose(out, ref, atol=1e-2, rtol=1e-2), "mismatch vs reference"

    print("KERNEL_OK")
</pallas_src>

<mosaic_0001>
module attributes {stable_mosaic.version = 11 : i64} {
  func.func @_linear_act_kernel(%arg0: i32, %arg1: i32, %arg2: i32, %arg3: memref<16x128xbf16, #tpu.memory_space<vmem>>, %arg4: memref<128x128xbf16, #tpu.memory_space<vmem>>, %arg5: memref<1x128xf32, #tpu.memory_space<vmem>>, %arg6: memref<16x128xf32, #tpu.memory_space<vmem>>, %arg7: memref<16x128xf32, #tpu.memory_space<vmem>>) attributes {dimension_semantics = [#tpu.dimension_semantics<parallel>, #tpu.dimension_semantics<parallel>, #tpu.dimension_semantics<arbitrary>], iteration_bounds = array<i64: 1, 1, 1>, scalar_prefetch = 0 : i64, scratch_operands = 1 : i64, tpu.core_type = #tpu.core_type<tc>, window_params = [{transform_indices = @transform_0, window_bounds = array<i64: 16, 128>}, {transform_indices = @transform_1, window_bounds = array<i64: 128, 128>}, {transform_indices = @transform_2, window_bounds = array<i64: 1, 128>}, {transform_indices = @transform_3, window_bounds = array<i64: 16, 128>}]} {
    %c0_i32 = arith.constant 0 : i32
    %0 = arith.cmpi eq, %arg2, %c0_i32 : i32
    %1 = arith.extui %0 : i1 to i32
    %c0_i32_0 = arith.constant 0 : i32
    %2 = arith.cmpi ne, %1, %c0_i32_0 : i32
    scf.if %2 {
      %cst_10 = arith.constant 0.000000e+00 : f32
      %12 = vector.broadcast %cst_10 : f32 to vector<16x128xf32>
      %c0_11 = arith.constant 0 : index
      %c0_12 = arith.constant 0 : index
      %13 = vector.load %arg7[%c0_11, %c0_12] : memref<16x128xf32, #tpu.memory_space<vmem>>, vector<16x128xf32>
      tpu.vector_store %arg7[%c0_11, %c0_12], %12 {strides = array<i32>} : memref<16x128xf32, #tpu.memory_space<vmem>>, vector<16x128xf32>,
    } else {
    }
    %c0 = arith.constant 0 : index
    %c0_1 = arith.constant 0 : index
    %3 = vector.load %arg7[%c0, %c0_1] : memref<16x128xf32, #tpu.memory_space<vmem>>, vector<16x128xf32>
    %c0_2 = arith.constant 0 : index
    %c0_3 = arith.constant 0 : index
    %4 = vector.load %arg3[%c0_2, %c0_3] : memref<16x128xbf16, #tpu.memory_space<vmem>>, vector<16x128xbf16>
    %c0_4 = arith.constant 0 : index
    %c0_5 = arith.constant 0 : index
    %5 = vector.load %arg4[%c0_4, %c0_5] : memref<128x128xbf16, #tpu.memory_space<vmem>>, vector<128x128xbf16>
    %cst = arith.constant dense<0.000000e+00> : vector<16x128xf32>
    %6 = tpu.matmul %4, %5, %cst {dimension_numbers = #tpu.dot_dimension_numbers<[1], [0], [0], [1], [0, 0, 1, 1], [], []>} : vector<16x128xbf16>, vector<128x128xbf16>, vector<16x128xf32> -> vector<16x128xf32>
    %7 = arith.addf %3, %6 : vector<16x128xf32>
    %c0_6 = arith.constant 0 : index
    %c0_7 = arith.constant 0 : index
    %8 = vector.load %arg7[%c0_6, %c0_7] : memref<16x128xf32, #tpu.memory_space<vmem>>, vector<16x128xf32>
    tpu.vector_store %arg7[%c0_6, %c0_7], %7 {strides = array<i32>} : memref<16x128xf32, #tpu.memory_space<vmem>>, vector<16x128xf32>,
    %c0_i32_8 = arith.constant 0 : i32
    %9 = arith.cmpi eq, %arg2, %c0_i32_8 : i32
    %10 = arith.extui %9 : i1 to i32
    %c0_i32_9 = arith.constant 0 : i32
    %11 = arith.cmpi ne, %10, %c0_i32_9 : i32
    scf.if %11 {
      %c0_10 = arith.constant 0 : index
      %c0_11 = arith.constant 0 : index
      %12 = vector.load %arg7[%c0_10, %c0_11] : memref<16x128xf32, #tpu.memory_space<vmem>>, vector<16x128xf32>
      %c0_12 = arith.constant 0 : index
      %c0_13 = arith.constant 0 : index
      %13 = vector.load %arg5[%c0_12, %c0_13] : memref<1x128xf32, #tpu.memory_space<vmem>>, vector<1x128xf32>
      %14 = vector.broadcast %13 : vector<1x128xf32> to vector<16x128xf32>
      %15 = arith.addf %12, %14 : vector<16x128xf32>
      %cst_14 = arith.constant 5.000000e-01 : f32
      %16 = vector.broadcast %cst_14 : f32 to vector<16x128xf32>
      %17 = arith.mulf %16, %15 : vector<16x128xf32>
      %cst_15 = arith.constant 0.707106769 : f32
      %18 = vector.broadcast %cst_15 : f32 to vector<16x128xf32>
      %19 = arith.mulf %15, %18 : vector<16x128xf32>
      %20 = math.erf %19 : vector<16x128xf32>
      %cst_16 = arith.constant 1.000000e+00 : f32
      %21 = vector.broadcast %cst_16 : f32 to vector<16x128xf32>
      %22 = arith.addf %21, %20 : vector<16x128xf32>
      %23 = arith.mulf %17, %22 : vector<16x128xf32>
      %c0_17 = arith.constant 0 : index
      %c0_18 = arith.constant 0 : index
      %24 = vector.load %arg6[%c0_17, %c0_18] : memref<16x128xf32, #tpu.memory_space<vmem>>, vector<16x128xf32>
      tpu.vector_store %arg6[%c0_17, %c0_18], %23 {strides = array<i32>} : memref<16x128xf32, #tpu.memory_space<vmem>>, vector<16x128xf32>,
    } else {
    }
    return
  }
  func.func @transform_0(%arg0: i32, %arg1: i32, %arg2: i32) -> (i32, i32) {
    %c0_i32 = arith.constant 0 : i32
    return %arg0, %arg2 : i32, i32
  }
  func.func @transform_1(%arg0: i32, %arg1: i32, %arg2: i32) -> (i32, i32) {
    %c0_i32 = arith.constant 0 : i32
    return %arg2, %arg1 : i32, i32
  }
  func.func @transform_2(%arg0: i32, %arg1: i32, %arg2: i32) -> (i32, i32) {
    %c0_i32 = arith.constant 0 : i32
    %c0_i32_0 = arith.constant 0 : i32
    return %c0_i32, %arg1 : i32, i32
  }
  func.func @transform_3(%arg0: i32, %arg1: i32, %arg2: i32) -> (i32, i32) {
    %c0_i32 = arith.constant 0 : i32
    return %arg0, %arg1 : i32, i32
  }
}

</mosaic_0001>

<bundles_post_ra>
// kernel: tpu_custom_call.1
= control target key start
LH: loop header
LB: loop body
LE: loop exit
PB: predicated region body
PF: predicated region fallthrough
CT: control target
= control target key end

     0   :  { %8 = vsyncpa [#allocation4], 0  ;;  %s455_s0 = inlined_call_operand.hbm [shape: bf16[16,128], index: 0, kind: input, shape index: {}]   ;;  %s456_s1 = inlined_call_operand.hbm [shape: bf16[128,128], index: 1, kind: input, shape index: {}]   ;;  %s457_s2 = inlined_call_operand.vmem [shape: f32[1,128], index: 2, kind: input, shape index: {}]   ;;  %s458_s3 = inlined_call_operand.hbm [shape: f32[16,128], index: 3, kind: output, shape index: {}]  }
   0x1   :  { %9 = vsyncpa [#allocation7], 0 }
   0x2   :  { %10 = vsyncpa [#allocation5], 0  ;;  %s15_s14 = sshll.u32 %s455_s0, 4  ;;  %s403_s15 = smov [#allocation3]   ;;  %s16_s14 = int_to_ptr.hbm [resolvable:$true] %s15_s14 }
   0x3   :  { %s17_s16 = sshll.u32 %s403_s15, 4  ;;  %s28_s19 = sshll.u32 %s456_s1, 4  ;;  %s18_s16 = int_to_ptr.vmem [resolvable:$true] %s17_s16  ;;  %s29_s19 = int_to_ptr.hbm [resolvable:$true] %s28_s19 }
   0x4   :  { %s404_s20 = smov 64   ;;  %s405_s21 = smov 4  }
   0x5   :  { %23 = dma.hbm_to_vmem [thread:$0]  %s16_s14, 128, %s18_s16, [#allocation4], %s404_s20, %s404_s20, %s405_s21  }
   0x6   :  { %s406_s22 = smov [#allocation6]  }
   0x7   :  { %s30_s23 = sshll.u32 %s406_s22, 4  ;;  %s31_s23 = int_to_ptr.vmem [resolvable:$true] %s30_s23 }
   0x8   :  { %36 = dma.hbm_to_vmem [thread:$0]  %s29_s19, 1024, %s31_s23, [#allocation7], %s404_s20, %s404_s20, %s405_s21  }
   0x9   :  { %397 = dma.done.wait [#allocation4], 128  }
   0xa   :  { %398 = vsyncadd [#allocation4], 4294967168 }
   0xb   :  { %399 = dma.done.wait [#allocation7], 1024  }
   0xc   :  { %400 = vsyncadd [#allocation7], 4294966272  ;;  %v312_v0 = vld [vmem:[#allocation6 + $0x38] sm:$0xff]  ;;  %v311_v1 = vld [vmem:[#allocation6 + $0x30] sm:$0xff]  ;;  %s252_s27 = sshll.u32 %s458_s3, 4  ;;  %s408_s28 = smov 128   ;;  %s253_s27 = int_to_ptr.hbm [resolvable:$true] %s252_s27 }
   0xd   :  { %127 = vmatpush.bf16.msra.mxu0 %v312_v0  ;;  %v310_v2 = vld [vmem:[#allocation6 + $0x28] sm:$0xff]  ;;  %v309_v3 = vld [vmem:[#allocation6 + $0x20] sm:$0xff]  ;;  %v308_v4 = vld [vmem:[#allocation6 + $0x18] sm:$0xff]  ;;  %s409_s29 = smov 8  }
   0xe   :  { %v307_v5 = vld [vmem:[#allocation6 + $0x10] sm:$0xff]  ;;  %v306_v6 = vld [vmem:[#allocation6 + $0x8] sm:$0xff]  ;;  %v305_v7 = vld [vmem:[#allocation6] sm:$0xff] }
   0xf   :  { %v304_v8 = vld [vmem:[#allocation3] sm:$0xff] }
  0x10   :  { %v320_v9 = vld [vmem:[%s457_s2] ss:$0 sm:$0xff]  ;;  %s407_s2 = smov [#allocation8]  }
  0x11   :  { %128 = vmatpush.bf16.msra.mxu0 %v311_v1  ;;  %s250_s24 = sshll.u32 %s407_s2, 4  ;;  %s251_s24 = int_to_ptr.vmem [resolvable:$true] %s250_s24 }
  0x15   :  { %129 = vmatpush.bf16.msra.mxu0 %v310_v2 }
  0x19   :  { %130 = vmatpush.bf16.msra.mxu0 %v309_v3 }
  0x1d   :  { %131 = vmatpush.bf16.msra.mxu0 %v308_v4 }
  0x21   :  { %132 = vmatpush.bf16.msra.mxu0 %v307_v5 }
  0x25   :  { %133 = vmatpush.bf16.msra.mxu0 %v306_v6 }
  0x29   :  { %134 = vmatpush.bf16.msra.mxu0 %v305_v7 }
  0x2c   :  { %135 = vmatmul.bf16.vlgmr.msra.gmra.mxu0 %v304_v8 }
  0xa9   :  { %v136_v10 = vpop.f32.mrf.mxu0 }
  0xaa   :  { %v439_v11 = vadd.f32 %v320_v9, %v136_v10 }
  0xac   :  { %v158_v12 = vmul.f32 0.70710677, %v439_v11 }
  0xae   :  { %v160_v13 = vmul.f32 %v158_v12, %v158_v12 }
  0xb0   :  { %v161_v14 = vmin.f32 %v160_v13, 16.0 }
  0xb1   :  { %v138_v15 = vpop.f32.mrf.mxu0 }
  0xb2   :  { %v162_v16 = vmul.f32 2.1237322e-06, %v161_v14  ;;  %v173_v17 = vmul.f32 3.8918573e-05, %v161_v14  ;;  %v442_v18 = vadd.f32 %v320_v9, %v138_v15 }
  0xb4   :  { %v163_v19 = vadd.f32 0.00028619796, %v162_v16  ;;  %v174_v20 = vadd.f32 0.001143296, %v173_v17  ;;  %v445_v21 = vmul.f32 0.70710677, %v442_v18 }
  0xb5   :  { %v156_v17 = vmul.f32 0.5, %v439_v11  ;;  %v157_v11 = vmul.f32 0.5, %v442_v18 }
  0xb6   :  { %v164_v22 = vmul.f32 %v163_v19, %v161_v14  ;;  %v175_v23 = vmul.f32 %v174_v20, %v161_v14  ;;  %v200_v24 = vmul.f32 %v445_v21, %v445_v21 }
  0xb8   :  { %v176_v25 = vadd.f32 0.014752088, %v175_v23  ;;  %v165_v26 = vadd.f32 0.0036580483, %v164_v22  ;;  %v201_v27 = vmin.f32 %v200_v24, 16.0 }
  0xba   :  { %v177_v28 = vmul.f32 %v176_v25, %v161_v14  ;;  %v202_v29 = vmul.f32 2.1237322e-06, %v201_v27  ;;  %v213_v30 = vmul.f32 3.8918573e-05, %v201_v27  ;;  %v166_v32 = vmul.f32 %v165_v26, %v161_v14 }
  0xbc   :  { %v178_v31 = vadd.f32 0.112945676, %v177_v28  ;;  %v203_v33 = vadd.f32 0.00028619796, %v202_v29  ;;  %v214_v34 = vadd.f32 0.001143296, %v213_v30 }
  0xbd   :  { %v167_v39 = vadd.f32 0.05243302, %v166_v32 }
  0xbe   :  { %v179_v35 = vmul.f32 %v178_v31, %v161_v14  ;;  %v204_v36 = vmul.f32 %v203_v33, %v201_v27  ;;  %v215_v37 = vmul.f32 %v214_v34, %v201_v27 }
  0xbf   :  { %v168_v45 = vmul.f32 %v167_v39, %v161_v14 }
  0xc0   :  { %v180_v38 = vadd.f32 0.4994258, %v179_v35  ;;  %v216_v40 = vadd.f32 0.014752088, %v215_v37  ;;  %v205_v42 = vadd.f32 0.0036580483, %v204_v36 }
  0xc1   :  { %v169_v49 = vadd.f32 0.18741608, %v168_v45 }
  0xc2   :  { %v181_v41 = vmul.f32 %v180_v38, %v161_v14  ;;  %v217_v43 = vmul.f32 %v216_v40, %v201_v27  ;;  %v206_v47 = vmul.f32 %v205_v42, %v201_v27 }
  0xc3   :  { %v170_v54 = vmul.f32 %v169_v49, %v161_v14 }
  0xc4   :  { %v182_v44 = vadd.f32 1.0, %v181_v41  ;;  %v218_v46 = vadd.f32 0.112945676, %v217_v43  ;;  %v207_v51 = vadd.f32 0.05243302, %v206_v47 }
  0xc5   :  { %v171_v60 = vadd.f32 1.1283791, %v170_v54 }
  0xc6   :  { %321 = vrcp.f32 %v182_v44  ;;  %v219_v48 = vmul.f32 %v218_v46, %v201_v27  ;;  %v208_v57 = vmul.f32 %v207_v51, %v201_v27  ;;  %v194_v59 = vand.u32 2147483648, %v182_v44 }
  0xc7   :  { %v192_v62 = vand.u32 2147483647, %v182_v44  ;;  %vm188_vm1 = vweird.f32 %v182_v44  ;;  %v172_v3 = vmul.f32 %v171_v60, %v158_v12 }
  0xc8   :  { %v220_v50 = vadd.f32 0.4994258, %v219_v48  ;;  %v209_v63 = vadd.f32 0.18741608, %v208_v57  ;;  %v195_v1 = vor.u32 1.1754944e-38, %v194_v59 }
  0xc9   :  { %vm193_vm3 = vcmp.eq.f32.partialorder %v192_v62, 8.507059e+37 }
  0xca   :  { %v221_v52 = vmul.f32 %v220_v50, %v201_v27  ;;  %v210_v6 = vmul.f32 %v209_v63, %v201_v27 }
  0xcc   :  { %v322_v53 = vpop.eup %321  ;;  %v222_v56 = vadd.f32 1.0, %v221_v52  ;;  %v211_v14 = vadd.f32 1.1283791, %v210_v6 }
  0xcd   :  { %v184_v55 = vmul.f32 %v322_v53, %v182_v44  ;;  %vm189_vm0 = vweird.f32 %v322_v53 }
  0xce   :  { %323 = vrcp.f32 %v222_v56  ;;  %vm190_vm2 = vmor %vm188_vm1, %vm189_vm0  ;;  %v234_v13 = vand.u32 2147483648, %v222_v56  ;;  %v232_v16 = vand.u32 2147483647, %v222_v56  ;;  %vm228_vm5 = vweird.f32 %v222_v56 }
  0xcf   :  { %v185_v58 = vsub.f32 1.0, %v184_v55  ;;  %v212_v23 = vmul.f32 %v211_v14, %v445_v21 }
  0xd0   :  { %v235_v12 = vor.u32 1.1754944e-38, %v234_v13  ;;  %vm233_vm7 = vcmp.eq.f32.partialorder %v232_v16, 8.507059e+37 }
  0xd1   :  { %v186_v61 = vmul.f32 %v322_v53, %v185_v58 }
  0xd3   :  { %v187_v0 = vadd.f32 %v322_v53, %v186_v61 }
  0xd4   :  { %v324_v2 = vpop.eup %323 }
  0xd5   :  { %v191_v4 = vsel %vm190_vm2, %v322_v53, %v187_v0  ;;  %v224_v7 = vmul.f32 %v324_v2, %v222_v56  ;;  %vm229_vm4 = vweird.f32 %v324_v2 }
  0xd6   :  { %v196_v5 = vsel %vm193_vm3, %v195_v1, %v191_v4  ;;  %vm230_vm6 = vmor %vm228_vm5, %vm229_vm4 }
  0xd7   :  { %v197_v8 = vmul.f32 %v196_v5, %v172_v3  ;;  %v225_v9 = vsub.f32 1.0, %v224_v7 }
  0xd9   :  { %v302_v10 = vclamps-f32 %v197_v8, 1.0  ;;  %v226_v15 = vmul.f32 %v324_v2, %v225_v9 }
  0xdb   :  { %v240_v19 = vadd.f32 1.0, %v302_v10  ;;  %v227_v20 = vadd.f32 %v324_v2, %v226_v15 }
  0xdd   :  { %v242_v22 = vmul.f32 %v240_v19, %v156_v17  ;;  %v231_v24 = vsel %vm230_vm6, %v324_v2, %v227_v20 }
  0xde   :  { %v236_v25 = vsel %vm233_vm7, %v235_v12, %v231_v24 }
  0xdf   :  { %244 = vst [vmem:[#allocation8] sm:$0xff] %v242_v22  ;;  %v237_v26 = vmul.f32 %v236_v25, %v212_v23 }
  0xe1   :  { %v303_v27 = vclamps-f32 %v237_v26, 1.0 }
  0xe3   :  { %v241_v28 = vadd.f32 1.0, %v303_v27 }
  0xe5   :  { %v243_v29 = vmul.f32 %v241_v28, %v157_v11 }
  0xe7   :  { %245 = vst [vmem:[#allocation8 + $0x8] sm:$0xff] %v243_v29 }
  0xe8   :  { %258 = dma.vmem_to_hbm [thread:$0]  %s251_s24, 256, %s253_s27, [#allocation5], %s408_s28, %s408_s28, %s409_s29  }
  0xe9   :  { %401 = dma.done.wait [#allocation5], 256  }
  0xea   :  { %402 = vsyncadd [#allocation5], 4294967040 }
  0xeb   :  { %263 = vsyncpa [#allocation4], 1 }
  0xec   :  { %264 = vsyncpa [#allocation7], 1 }
  0xed   :  { %265 = vsyncpa [#allocation5], 1 }

</bundles_post_ra>
